<compile_context>
chip_gen: v6e
topology: v6e:2x2x1
jax: 0.10.0
libtpu: 0.0.40
codegen_flags: <defaults>
</compile_context>

<pallas_src>
import jax
import jax.numpy as jnp
from jax.experimental import pallas as pl
from jax.experimental.pallas import tpu as pltpu


def _round_up(a, b):
    return ((a + b - 1) // b) * b


def _vmem_capacity_bytes():
    """Physical VMEM per core; conservative 64 MiB (v7x-sized) if the query fails."""
    try:
        return int(pltpu.get_tpu_info().vmem_capacity_bytes)
    except Exception:
        return 64 * 1024 * 1024


def _mxu_lane_pad():
    """Output lane padding granularity: 128 on 128-wide MXUs (<= v5),
    256 on 256-wide MXUs (v6e / v7x)."""
    try:
        kind = jax.devices()[0].device_kind.lower()
    except Exception:
        kind = ""
    if any(v in kind for v in ("v2", "v3", "v4", "v5")):
        return 128
    return 256


def _choose_e_pad(E):
    e_pad = _round_up(E, 128)
    # On 256x256-MXU parts an odd multiple of 128 uses only half the MXU
    # columns; bump to 256 (only when E is large enough that the extra padded
    # output bytes don't matter for the memory-bound small-E case).
    if E > 128 and _mxu_lane_pad() == 256 and e_pad % 256 != 0:
        e_pad = _round_up(E, 256)
    return e_pad


def _choose_tile_m(M, K, E_pad, in_bytes, out_bytes, row_align, tm_cap):
    """Largest aligned M-tile that (a) fits the generation-aware VMEM budget
    with double-buffered x/out tiles and a single-buffered resident weight,
    (b) leaves >= 2 grid steps so v7x's two TensorCores both get work, and
    (c) divides M when possible (no HBM pad pass over the patch matrix)."""
    vmem_cap = _vmem_capacity_bytes()
    # ~96 MiB budget on 128 MiB parts (v5e/v6e), ~48 MiB on 64 MiB v7x.
    budget = max(32 * 1024 * 1024, min(int(vmem_cap * 0.75), 100 * 1024 * 1024))

    def vmem_need(t):
        return (2 * t * K * in_bytes            # x tile (double-buffered)
                + 1 * K * E_pad * in_bytes      # resident weight (1 buffer)
                + E_pad * 4                     # resident f32 bias
                + 2 * t * E_pad * out_bytes)    # out tile (double-buffered)

    tm = min(int(tm_cap), _round_up(M, row_align))
    tm = max(row_align, _round_up(tm, row_align))
    while tm > row_align and vmem_need(tm) > budget:
        tm = max(row_align, _round_up(tm // 2, row_align))

    # Keep at least two M-tiles so a 2-TensorCore chip (v7x) splits the grid.
    if M > 2 * row_align:
        tm = min(tm, _round_up(-(-M // 2), row_align))
        tm = max(row_align, tm)

    # Prefer a tile that divides M exactly (avoids padded rows + pad copy);
    # only accept a divisor that does not shrink the tile by more than 2x.
    if M % tm != 0:
        t = tm - row_align
        while t >= max(row_align, tm // 2):
            if M % t == 0:
                tm = t
                break
            t -= row_align
    return tm, budget


def prepare_patch_embed_params(weight, bias, *, compute_dtype=jnp.bfloat16):
    """Hoistable weight/bias preprocessing (call once, reuse every forward).

    weight: (E, C, kT, pH, pW) (PyTorch Conv3d layout); bias: (E,).
    Returns the (K, E_pad) weight matrix in compute_dtype and the (1, E_pad)
    f32 bias (E padded so the output tile is lane-dense / MXU-friendly).
    """
    E = weight.shape[0]
    K = int(weight.shape[1] * weight.shape[2] * weight.shape[3] * weight.shape[4])
    E_pad = _choose_e_pad(E)
    wm = jnp.transpose(weight.reshape(E, K))       # (K, E); K-order = (C, kT, pH, pW)
    bm = bias
    if E_pad != E:
        wm = jnp.pad(wm, ((0, 0), (0, E_pad - E)))
        bm = jnp.pad(bm, (0, E_pad - E))
    return {
        "wm": wm.astype(compute_dtype),
        "bm": bm.reshape(1, E_pad).astype(jnp.float32),
        "E": E,
        "K": K,
    }


def _patch_proj_kernel(x_ref, w_ref, b_ref, o_ref):
    # x_ref: (TM, K) patch rows; w_ref: (K, E_pad) VMEM-resident weights;
    # b_ref: (1, E_pad) f32 bias; o_ref: (TM, E_pad) lane-dense output tile.
    acc = jnp.dot(x_ref[...], w_ref[...], preferred_element_type=jnp.float32)
    o_ref[...] = (acc + b_ref[...]).astype(o_ref.dtype)


def patch_embed_forward(x, weight, bias, patch_size, tubelet_size, *,
                        prepared=None, compute_dtype=None, out_dtype=None,
                        channels_last=True, tm=2048):
    """x: (B, C, T, H, W); weight: (E, C, kT, pH, pW); bias: (E,).

    Computes Conv3d(kernel == stride == (kT, pH, pW)).  Returns channel-last
    (B, T//kT, H//pH, W//pW, E) by default (no output transpose); pass
    channels_last=False for the exact PyTorch (B, E, T', H', W') layout
    (costs one extra HBM read+write of the output).
    """
    B, C, T, H, W = x.shape
    kT = tubelet_size
    pH, pW = patch_size
    assert T % kT == 0 and H % pH == 0 and W % pW == 0, "input not divisible by patch"

    T_out, H_out, W_out = T // kT, H // pH, W // pW
    M = B * T_out * H_out * W_out
    K = C * kT * pH * pW

    if out_dtype is None:
        out_dtype = x.dtype          # pass bf16 here to also halve output writeback
    if compute_dtype is None:
        # bf16 runs the MXU at peak on v6e/v7x and halves X/W DMA bytes;
        # accumulation and the bias add stay in f32.
        compute_dtype = jnp.bfloat16 if x.dtype == jnp.float32 else x.dtype

    if prepared is None:
        prepared = prepare_patch_embed_params(weight, bias, compute_dtype=compute_dtype)
    wm, bm, E = prepared["wm"], prepared["bm"], prepared["E"]
    assert prepared["K"] == K, "prepared params do not match input/patch shapes"
    E_pad = wm.shape[1]
    compute_dtype = wm.dtype

    # ---- layout glue (one fused XLA copy): NCDHW -> (M, K) patch matrix ----
    # Cast first so the materialized patch matrix is compute_dtype-wide.
    # TODO(synk): fuse this patchify into the kernel (pl.ANY + DMA gather) to
    # remove the remaining extra HBM pass over the input.
    xc = x.astype(compute_dtype)
    xp = xc.reshape(B, C, T_out, kT, H_out, pH, W_out, pW)
    xp = jnp.transpose(xp, (0, 2, 4, 6, 1, 3, 5, 7)).reshape(M, K)

    in_bytes = jnp.dtype(compute_dtype).itemsize
    out_bytes = jnp.dtype(out_dtype).itemsize
    row_align = 16 if in_bytes < 4 else 8
    TM, vmem_limit = _choose_tile_m(M, K, E_pad, in_bytes, out_bytes, row_align, tm)

    M_pad = _round_up(M, TM)
    if M_pad != M:
        # Rare (only when no aligned divisor of M exists near TM); pads at
        # compute_dtype width so the extra pass is as cheap as possible.
        xp = jnp.pad(xp, ((0, M_pad - M), (0, 0)))

    grid = (M_pad // TM,)
    cost = pl.CostEstimate(
        flops=2 * M_pad * K * E_pad,
        transcendentals=0,
        bytes_accessed=(M_pad * K + K * E_pad) * in_bytes + M_pad * E_pad * out_bytes,
    )

    def _call(single_buffer_weights):
        if single_buffer_weights:
            # Constant block index -> weight/bias stay VMEM-resident; a single
            # buffer avoids holding two copies of the (K, E_pad) weight.
            w_spec = pl.BlockSpec((K, E_pad), lambda i: (0, 0),
                                  pipeline_mode=pl.Buffered(1))
            b_spec = pl.BlockSpec((1, E_pad), lambda i: (0, 0),
                                  pipeline_mode=pl.Buffered(1))
        else:
            w_spec = pl.BlockSpec((K, E_pad), lambda i: (0, 0))
            b_spec = pl.BlockSpec((1, E_pad), lambda i: (0, 0))
        return pl.pallas_call(
            _patch_proj_kernel,
            out_shape=jax.ShapeDtypeStruct((M_pad, E_pad), out_dtype),
            grid_spec=pltpu.PrefetchScalarGridSpec(
                num_scalar_prefetch=0,
                grid=grid,
                in_specs=[
                    pl.BlockSpec((TM, K), lambda i: (i, 0)),   # streamed patch rows
                    w_spec,
                    b_spec,
                ],
                out_specs=pl.BlockSpec((TM, E_pad), lambda i: (i, 0)),
            ),
            compiler_params=pltpu.CompilerParams(
                # Independent M tiles -> shard the grid across v7x's two
                # TensorCores; harmless on single-TC v5e/v6e.
                dimension_semantics=("parallel",),
                vmem_limit_bytes=vmem_limit,
            ),
            cost_estimate=cost,
        )(xp, wm, bm)

    try:
        out = _call(True)
    except Exception:
        # Conservative fallback if single-buffered (pl.Buffered(1)) constant
        # blocks are rejected by the installed Pallas version.
        out = _call(False)

    out = out[:M, :E].reshape(B, T_out, H_out, W_out, E)
    if not channels_last:
        # Exact PyTorch Conv3d layout; costs a full extra HBM pass. Prefer the
        # default channel-last output and fuse the layout into the consumer.
        out = jnp.transpose(out, (0, 4, 1, 2, 3))
    return out


if __name__ == "__main__":
    # Small shapes consistent with the module: img_size=16, patch_size=8,
    # kernel_size (tubelet)=2, in_chans=4, embed_dim=32, B=2, T=4.
    B, C, T, H, W = 2, 4, 4, 16, 16
    E = 32
    patch_size = (8, 8)
    tubelet = 2

    key = jax.random.PRNGKey(0)
    kx, kw, kb = jax.random.split(key, 3)
    x = jax.random.normal(kx, (B, C, T, H, W), dtype=jnp.float32)
    weight = 0.02 * jax.random.normal(
        kw, (E, C, tubelet, patch_size[0], patch_size[1]), dtype=jnp.float32)
    bias = 0.01 * jax.random.normal(kb, (E,), dtype=jnp.float32)

    # Hoisted (once-per-model) weight/bias preprocessing.
    prepared = prepare_patch_embed_params(weight, bias, compute_dtype=jnp.bfloat16)

    out = patch_embed_forward(x, weight, bias, patch_size, tubelet,
                              prepared=prepared)   # channel-last (B, T', H', W', E)
    out = jax.block_until_ready(out)

    # Reference: Conv3d with kernel == stride as a single einsum, using the
    # same bf16-rounded operands the kernel consumes (accumulation in f32).
    T_out, H_out, W_out = T // tubelet, H // patch_size[0], W // patch_size[1]
    x_r = x.astype(jnp.bfloat16).astype(jnp.float32)
    w_r = weight.astype(jnp.bfloat16).astype(jnp.float32)
    xp_ref = x_r.reshape(B, C, T_out, tubelet, H_out, patch_size[0],
                         W_out, patch_size[1])
    ref_nchw = jnp.einsum("bczkhpwq,eckpq->bezhw", xp_ref, w_r)
    ref_nchw = ref_nchw + bias[None, :, None, None, None]
    ref_cl = jnp.transpose(ref_nchw, (0, 2, 3, 4, 1))   # same data, channel-last

    assert out.shape == (B, T_out, H_out, W_out, E), f"bad shape {out.shape}"
    max_err = float(jnp.max(jnp.abs(out - ref_cl)))
    assert max_err < 2e-2, f"mismatch vs reference, max_err={max_err}"
    print("KERNEL_OK")
</pallas_src>

<mosaic_0001>
module attributes {stable_mosaic.version = 11 : i64} {
  func.func @_patch_proj_kernel(%arg0: i32, %arg1: memref<16x512xbf16, #tpu.memory_space<vmem>>, %arg2: memref<512x128xbf16, #tpu.memory_space<vmem>>, %arg3: memref<1x128xf32, #tpu.memory_space<vmem>>, %arg4: memref<16x128xf32, #tpu.memory_space<vmem>>) attributes {dimension_semantics = [#tpu.dimension_semantics<parallel>], iteration_bounds = array<i64: 1>, scalar_prefetch = 0 : i64, scratch_operands = 0 : i64, tpu.core_type = #tpu.core_type<tc>, window_params = [{transform_indices = @transform_0, window_bounds = array<i64: 16, 512>}, {pipeline_mode = #tpu.pipeline_mode<synchronous>, transform_indices = @transform_1, window_bounds = array<i64: 512, 128>}, {pipeline_mode = #tpu.pipeline_mode<synchronous>, transform_indices = @transform_2, window_bounds = array<i64: 1, 128>}, {transform_indices = @transform_3, window_bounds = array<i64: 16, 128>}]} {
    %c0 = arith.constant 0 : index
    %c0_0 = arith.constant 0 : index
    %0 = vector.load %arg1[%c0, %c0_0] : memref<16x512xbf16, #tpu.memory_space<vmem>>, vector<16x512xbf16>
    %c0_1 = arith.constant 0 : index
    %c0_2 = arith.constant 0 : index
    %1 = vector.load %arg2[%c0_1, %c0_2] : memref<512x128xbf16, #tpu.memory_space<vmem>>, vector<512x128xbf16>
    %cst = arith.constant dense<0.000000e+00> : vector<16x128xf32>
    %2 = tpu.matmul %0, %1, %cst {dimension_numbers = #tpu.dot_dimension_numbers<[1], [0], [0], [1], [0, 0, 1, 1], [], []>} : vector<16x512xbf16>, vector<512x128xbf16>, vector<16x128xf32> -> vector<16x128xf32>
    %c0_3 = arith.constant 0 : index
    %c0_4 = arith.constant 0 : index
    %3 = vector.load %arg3[%c0_3, %c0_4] : memref<1x128xf32, #tpu.memory_space<vmem>>, vector<1x128xf32>
    %4 = vector.broadcast %3 : vector<1x128xf32> to vector<16x128xf32>
    %5 = arith.addf %2, %4 : vector<16x128xf32>
    %c0_5 = arith.constant 0 : index
    %c0_6 = arith.constant 0 : index
    %6 = vector.load %arg4[%c0_5, %c0_6] : memref<16x128xf32, #tpu.memory_space<vmem>>, vector<16x128xf32>
    tpu.vector_store %arg4[%c0_5, %c0_6], %5 {strides = array<i32>} : memref<16x128xf32, #tpu.memory_space<vmem>>, vector<16x128xf32>,
    return
  }
  func.func @transform_0(%arg0: i32) -> (i32, i32) {
    %c0_i32 = arith.constant 0 : i32
    %c0_i32_0 = arith.constant 0 : i32
    return %arg0, %c0_i32 : i32, i32
  }
  func.func @transform_1(%arg0: i32) -> (i32, i32) {
    %c0_i32 = arith.constant 0 : i32
    %c0_i32_0 = arith.constant 0 : i32
    %c0_i32_1 = arith.constant 0 : i32
    return %c0_i32, %c0_i32_0 : i32, i32
  }
  func.func @transform_2(%arg0: i32) -> (i32, i32) {
    %c0_i32 = arith.constant 0 : i32
    %c0_i32_0 = arith.constant 0 : i32
    %c0_i32_1 = arith.constant 0 : i32
    return %c0_i32, %c0_i32_0 : i32, i32
  }
  func.func @transform_3(%arg0: i32) -> (i32, i32) {
    %c0_i32 = arith.constant 0 : i32
    %c0_i32_0 = arith.constant 0 : i32
    return %arg0, %c0_i32 : i32, i32
  }
}

module attributes {stable_mosaic.version = 11 : i64} {
  func.func @_patch_proj_kernel(%arg0: i32, %arg1: memref<16x512xbf16, #tpu.memory_space<vmem>>, %arg2: memref<512x128xbf16, #tpu.memory_space<vmem>>, %arg3: memref<1x128xf32, #tpu.memory_space<vmem>>, %arg4: memref<16x128xf32, #tpu.memory_space<vmem>>) attributes {dimension_semantics = [#tpu.dimension_semantics<parallel>], iteration_bounds = array<i64: 1>, scalar_prefetch = 0 : i64, scratch_operands = 0 : i64, tpu.core_type = #tpu.core_type<tc>, window_params = [{transform_indices = @transform_0, window_bounds = array<i64: 16, 512>}, {pipeline_mode = #tpu.pipeline_mode<synchronous>, transform_indices = @transform_1, window_bounds = array<i64: 512, 128>}, {pipeline_mode = #tpu.pipeline_mode<synchronous>, transform_indices = @transform_2, window_bounds = array<i64: 1, 128>}, {transform_indices = @transform_3, window_bounds = array<i64: 16, 128>}]} {
    %c0 = arith.constant 0 : index
    %c0_0 = arith.constant 0 : index
    %0 = vector.load %arg1[%c0, %c0_0] : memref<16x512xbf16, #tpu.memory_space<vmem>>, vector<16x512xbf16>
    %c0_1 = arith.constant 0 : index
    %c0_2 = arith.constant 0 : index
    %1 = vector.load %arg2[%c0_1, %c0_2] : memref<512x128xbf16, #tpu.memory_space<vmem>>, vector<512x128xbf16>
    %cst = arith.constant dense<0.000000e+00> : vector<16x128xf32>
    %2 = tpu.matmul %0, %1, %cst {dimension_numbers = #tpu.dot_dimension_numbers<[1], [0], [0], [1], [0, 0, 1, 1], [], []>} : vector<16x512xbf16>, vector<512x128xbf16>, vector<16x128xf32> -> vector<16x128xf32>
    %c0_3 = arith.constant 0 : index
    %c0_4 = arith.constant 0 : index
    %3 = vector.load %arg3[%c0_3, %c0_4] : memref<1x128xf32, #tpu.memory_space<vmem>>, vector<1x128xf32>
    %4 = vector.broadcast %3 : vector<1x128xf32> to vector<16x128xf32>
    %5 = arith.addf %2, %4 : vector<16x128xf32>
    %c0_5 = arith.constant 0 : index
    %c0_6 = arith.constant 0 : index
    %6 = vector.load %arg4[%c0_5, %c0_6] : memref<16x128xf32, #tpu.memory_space<vmem>>, vector<16x128xf32>
    tpu.vector_store %arg4[%c0_5, %c0_6], %5 {strides = array<i32>} : memref<16x128xf32, #tpu.memory_space<vmem>>, vector<16x128xf32>,
    return
  }
  func.func @transform_0(%arg0: i32) -> (i32, i32) {
    %c0_i32 = arith.constant 0 : i32
    %c0_i32_0 = arith.constant 0 : i32
    return %arg0, %c0_i32 : i32, i32
  }
  func.func @transform_1(%arg0: i32) -> (i32, i32) {
    %c0_i32 = arith.constant 0 : i32
    %c0_i32_0 = arith.constant 0 : i32
    %c0_i32_1 = arith.constant 0 : i32
    return %c0_i32, %c0_i32_0 : i32, i32
  }
  func.func @transform_2(%arg0: i32) -> (i32, i32) {
    %c0_i32 = arith.constant 0 : i32
    %c0_i32_0 = arith.constant 0 : i32
    %c0_i32_1 = arith.constant 0 : i32
    return %c0_i32, %c0_i32_0 : i32, i32
  }
  func.func @transform_3(%arg0: i32) -> (i32, i32) {
    %c0_i32 = arith.constant 0 : i32
    %c0_i32_0 = arith.constant 0 : i32
    return %arg0, %c0_i32 : i32, i32
  }
}

</mosaic_0001>

<bundles_post_ra>
// kernel: tpu_custom_call.1
= control target key start
LH: loop header
LB: loop body
LE: loop exit
PB: predicated region body
PF: predicated region fallthrough
CT: control target
= control target key end

     0   :  { %8 = vsyncpa [#allocation3], 0  ;;  %s668_s0 = inlined_call_operand.hbm [shape: bf16[16,512], index: 0, kind: input, shape index: {}]   ;;  %s669_s1 = inlined_call_operand.hbm [shape: bf16[512,128], index: 1, kind: input, shape index: {}]   ;;  %s670_s2 = inlined_call_operand.vmem [shape: f32[1,128], index: 2, kind: input, shape index: {}]   ;;  %s671_s3 = inlined_call_operand.hbm [shape: f32[16,128], index: 3, kind: output, shape index: {}]  }
   0x1   :  { %9 = vsyncpa [#allocation6], 0 }
   0x2   :  { %10 = vsyncpa [#allocation4], 0  ;;  %s627_s12 = smov [#allocation2]  }
   0x3   :  { %s16_s13 = sshll.u32 %s627_s12, 4  ;;  %s17_s13 = int_to_ptr.vmem [resolvable:$true] %s16_s13 }
   0x4   :  { %s569_s14 = scalar_lea.vmem %s17_s13, 512  ;;  %p574_p1 = scmp.lt.s32.totalorder %s17_s13, %s17_s13 }
   0x5   :  { %p570_p0 = scmp.ne.s32.totalorder %s17_s13, %s569_s14  ;;  %p575_p2 = scmp.lt.s32.totalorder %s569_s14, %s569_s14 }
   0x7   :  { %p576_p3 = por %p575_p2, %p574_p1 }
   0x9   :  { %p577_p4 = pnand %p576_p3, %p570_p0 }
   0xb   :  { %580 = shalt.err (!%p577_p4)
}
   0xc   :  { %s628_s15 = smov 256   ;;  %s629_s16 = smov 16  }
   0xd   :  { %22 = dma.hbm_to_vmem [thread:$0]  %s668_s0, 512, %s17_s13, [#allocation3], %s628_s15, %s628_s15, %s629_s16  }
   0xe   :  { %s630_s19 = smov [#allocation5]  }
   0xf   :  { %s28_s20 = sshll.u32 %s630_s19, 4  ;;  %s29_s20 = int_to_ptr.vmem [resolvable:$true] %s28_s20 }
  0x10   :  { %s589_s21 = scalar_lea.vmem %s29_s20, 4096  ;;  %p594_p6 = scmp.lt.s32.totalorder %s29_s20, %s29_s20 }
  0x11   :  { %p590_p5 = scmp.ne.s32.totalorder %s29_s20, %s589_s21  ;;  %p595_p7 = scmp.lt.s32.totalorder %s589_s21, %s589_s21 }
  0x13   :  { %p596_p8 = por %p595_p7, %p594_p6 }
  0x15   :  { %p597_p9 = pnand %p596_p8, %p590_p5 }
  0x17   :  { %600 = shalt.err (!%p597_p9)
}
  0x18   :  { %s631_s22 = smov 64   ;;  %s632_s23 = smov 4  }
  0x19   :  { %34 = dma.hbm_to_vmem [thread:$0]  %s669_s1, 4096, %s29_s20, [#allocation6], %s631_s22, %s631_s22, %s632_s23  }
  0x1a   :  { %621 = dma.done.wait [#allocation3], 512  }
  0x1b   :  { %622 = vsyncadd [#allocation3], 4294966784 }
  0x1c   :  { %623 = dma.done.wait [#allocation6], 4096  }
  0x1d   :  { %624 = vsyncadd [#allocation6], 4294963200  ;;  %v523_v0 = vld [vmem:[#allocation5 + $0x78] sm:$0xff]   ;;  %v527_v4 = vld [vmem:[#allocation5 + $0x70] sm:$0xff]   ;;  %s633_s26 = smov [#allocation7]  }
  0x1e   :  { %v524_v1 = vld [vmem:[#allocation5 + $0xf8] sm:$0xff]   ;;  %470 = vmatprep.subr.bf16.mxu0 %v523_v0  ;;  %v528_v5 = vld [vmem:[#allocation5 + $0xf0] sm:$0xff]   ;;  %v531_v8 = vld [vmem:[#allocation5 + $0x68] sm:$0xff]   ;;  %s420_s27 = sshll.u32 %s633_s26, 4  ;;  %s421_s27 = int_to_ptr.vmem [resolvable:$true] %s420_s27 }
  0x1f   :  { %v525_v2 = vld [vmem:[#allocation5 + $0x38] sm:$0xff]   ;;  %492 = vmatprep.subr.bf16.mxu1 %v524_v1  ;;  %v529_v6 = vld [vmem:[#allocation5 + $0x30] sm:$0xff]   ;;  %v532_v9 = vld [vmem:[#allocation5 + $0xe8] sm:$0xff]   ;;  %p606_p11 = scmp.lt.s32.totalorder %s421_s27, %s421_s27 }
  0x20   :  { %v526_v3 = vld [vmem:[#allocation5 + $0xb8] sm:$0xff]   ;;  %471 = vmatpush3.bf16.msra.mxu0 %v525_v2  ;;  %v530_v7 = vld [vmem:[#allocation5 + $0xb0] sm:$0xff]   ;;  %v533_v10 = vld [vmem:[#allocation5 + $0x28] sm:$0xff]  }
  0x21   :  { %493 = vmatpush3.bf16.msra.mxu1 %v526_v3  ;;  %472 = vmatprep.subr.bf16.mxu0 %v527_v4  ;;  %v534_v11 = vld [vmem:[#allocation5 + $0xa8] sm:$0xff]   ;;  %v535_v12 = vld [vmem:[#allocation5 + $0x60] sm:$0xff]   ;;  %v539_v16 = vld [vmem:[#allocation5 + $0x58] sm:$0xff]  }
  0x22   :  { %494 = vmatprep.subr.bf16.mxu1 %v528_v5  ;;  %v536_v13 = vld [vmem:[#allocation5 + $0xe0] sm:$0xff]   ;;  %v540_v17 = vld [vmem:[#allocation5 + $0xd8] sm:$0xff]   ;;  %v543_v20 = vld [vmem:[#allocation5 + $0x50] sm:$0xff]  }
  0x23   :  { %v537_v14 = vld [vmem:[#allocation5 + $0x20] sm:$0xff]   ;;  %v541_v18 = vld [vmem:[#allocation5 + $0x18] sm:$0xff]   ;;  %v544_v21 = vld [vmem:[#allocation5 + $0xd0] sm:$0xff]  }
  0x24   :  { %473 = vmatpush3.bf16.msra.mxu0 %v529_v6  ;;  %v538_v15 = vld [vmem:[#allocation5 + $0xa0] sm:$0xff]   ;;  %v542_v19 = vld [vmem:[#allocation5 + $0x98] sm:$0xff]   ;;  %v545_v22 = vld [vmem:[#allocation5 + $0x10] sm:$0xff]  }
  0x25   :  { %495 = vmatpush3.bf16.msra.mxu1 %v530_v7  ;;  %474 = vmatprep.subr.bf16.mxu0 %v531_v8  ;;  %v546_v23 = vld [vmem:[#allocation5 + $0x90] sm:$0xff]   ;;  %v547_v24 = vld [vmem:[#allocation5 + $0x48] sm:$0xff]   ;;  %v551_v28 = vld [vmem:[#allocation5 + $0x40] sm:$0xff]  }
  0x26   :  { %496 = vmatprep.subr.bf16.mxu1 %v532_v9  ;;  %v548_v25 = vld [vmem:[#allocation5 + $0xc8] sm:$0xff]   ;;  %v552_v29 = vld [vmem:[#allocation5 + $0xc0] sm:$0xff]  }
  0x27   :  { %v549_v26 = vld [vmem:[#allocation5 + $0x8] sm:$0xff]   ;;  %v553_v30 = vld [vmem:[#allocation5] sm:$0xff]  }
  0x28   :  { %475 = vmatpush3.bf16.msra.mxu0 %v533_v10  ;;  %v550_v27 = vld [vmem:[#allocation5 + $0x88] sm:$0xff]   ;;  %v554_v31 = vld [vmem:[#allocation5 + $0x80] sm:$0xff]  }
  0x29   :  { %497 = vmatpush3.bf16.msra.mxu1 %v534_v11  ;;  %476 = vmatprep.subr.bf16.mxu0 %v535_v12  ;;  %v555_v32 = vld [vmem:[#allocation2] ss:$16 sps:$4 sm:$0xff]   ;;  %v557_v33 = vld [vmem:[#allocation2 + $0x4] ss:$16 sps:$4 sm:$0xff]   ;;  %v558_v34 = vld [vmem:[#allocation2 + $0x8] ss:$16 sps:$4 sm:$0xff]  }
  0x2a   :  { %498 = vmatprep.subr.bf16.mxu1 %v536_v13  ;;  %v560_v35 = vld [vmem:[#allocation2 + $0xc] ss:$16 sps:$4 sm:$0xff]   ;;  %363 = vmatprep.mubr.bf16.mxu0 %v557_v33  ;;  %v433_v38 = vld [vmem:[%s670_s2] ss:$0 sm:$0xff]  ;;  %s601_s2 = scalar_lea.vmem %s421_s27, 256 }
  0x2b   :  { %404 = vmatprep.mubr.bf16.mxu1 %v560_v35  ;;  %p602_p10 = scmp.ne.s32.totalorder %s421_s27, %s601_s2  ;;  %p607_p12 = scmp.lt.s32.totalorder %s601_s2, %s601_s2 }
  0x2c   :  { %477 = vmatpush3.bf16.msra.mxu0 %v537_v14 }
  0x2d   :  { %499 = vmatpush3.bf16.msra.mxu1 %v538_v15  ;;  %478 = vmatprep.subr.bf16.mxu0 %v539_v16  ;;  %p608_p13 = por %p607_p12, %p606_p11 }
  0x2e   :  { %500 = vmatprep.subr.bf16.mxu1 %v540_v17 }
  0x2f   :  { %p609_p0 = pnand %p608_p13, %p602_p10 }
  0x30   :  { %479 = vmatpush3.bf16.msra.mxu0 %v541_v18 }
  0x31   :  { %501 = vmatpush3.bf16.msra.mxu1 %v542_v19  ;;  %480 = vmatprep.subr.bf16.mxu0 %v543_v20 }
  0x32   :  { %502 = vmatprep.subr.bf16.mxu1 %v544_v21 }
  0x34   :  { %481 = vmatpush3.bf16.msra.mxu0 %v545_v22 }
  0x35   :  { %503 = vmatpush3.bf16.msra.mxu1 %v546_v23  ;;  %482 = vmatprep.subr.bf16.mxu0 %v547_v24 }
  0x36   :  { %504 = vmatprep.subr.bf16.mxu1 %v548_v25 }
  0x38   :  { %483 = vmatpush3.bf16.msra.mxu0 %v549_v26 }
  0x39   :  { %505 = vmatpush3.bf16.msra.mxu1 %v550_v27  ;;  %484 = vmatprep.subr.bf16.mxu0 %v551_v28 }
  0x3a   :  { %506 = vmatprep.subr.bf16.mxu1 %v552_v29 }
  0x3c   :  { %485 = vmatpush3.bf16.msra.mxu0 %v553_v30 }
  0x3d   :  { %507 = vmatpush3.bf16.msra.mxu1 %v554_v31 }
  0x3f   :  { %364 = vmatmul.mubr.bf16.vlgmr.msra.gmra.mxu0 %v555_v32 }
  0x40   :  { %405 = vmatmul.mubr.bf16.vlgmr.msra.gmra.mxu1 %v558_v34 }
  0xff   :  { %v486_v36 = vpop.f32.mrf.mxu0 }
 0x100   :  { %v508_v37 = vpop.f32.mrf.mxu1 }
 0x101   :  { %v487_v39 = vpop.f32.mrf.mxu0 }
 0x102   :  { %v488_v40 = vadd.f32 %v487_v39, %v486_v36  ;;  %v509_v41 = vpop.f32.mrf.mxu1 }
 0x103   :  { %v489_v42 = vpop.f32.mrf.mxu0  ;;  %v510_v44 = vadd.f32 %v509_v41, %v508_v37 }
 0x104   :  { %v366_v43 = vadd.f32 %v488_v40, %v433_v38  ;;  %v511_v45 = vpop.f32.mrf.mxu1 }
 0x105   :  { %v490_v46 = vpop.f32.mrf.mxu0 }
 0x106   :  { %v407_v47 = vadd.f32 %v510_v44, %v366_v43  ;;  %v491_v48 = vadd.f32 %v490_v46, %v489_v42  ;;  %v512_v49 = vpop.f32.mrf.mxu1 }
 0x107   :  { %v513_v51 = vadd.f32 %v512_v49, %v511_v45 }
 0x108   :  { %413 = vst [vmem:[#allocation7] sm:$0xff] %v407_v47  ;;  %v369_v50 = vadd.f32 %v491_v48, %v433_v38 }
 0x10a   :  { %v410_v52 = vadd.f32 %v513_v51, %v369_v50 }
 0x10c   :  { %414 = vst [vmem:[#allocation7 + $0x8] sm:$0xff] %v410_v52 }
 0x10d   :  { %612 = shalt.err (!%p609_p0)
}
 0x10e   :  { %s634_s28 = smov 128   ;;  %s635_s29 = smov 8  }
 0x10f   :  { %426 = dma.vmem_to_hbm [thread:$0]  %s421_s27, 256, %s671_s3, [#allocation4], %s634_s28, %s634_s28, %s635_s29  }
 0x110   :  { %625 = dma.done.wait [#allocation4], 256  }
 0x111   :  { %626 = vsyncadd [#allocation4], 4294967040 }
 0x112   :  { %430 = vsyncpa [#allocation3], 1 }
 0x113   :  { %431 = vsyncpa [#allocation6], 1 }
 0x114   :  { %432 = vsyncpa [#allocation4], 1 }

// kernel: tpu_custom_call.1
= control target key start
LH: loop header
LB: loop body
LE: loop exit
PB: predicated region body
PF: predicated region fallthrough
CT: control target
= control target key end

     0   :  { %8 = vsyncpa [#allocation3], 0  ;;  %s668_s0 = inlined_call_operand.hbm [shape: bf16[16,512], index: 0, kind: input, shape index: {}]   ;;  %s669_s1 = inlined_call_operand.hbm [shape: bf16[512,128], index: 1, kind: input, shape index: {}]   ;;  %s670_s2 = inlined_call_operand.vmem [shape: f32[1,128], index: 2, kind: input, shape index: {}]   ;;  %s671_s3 = inlined_call_operand.hbm [shape: f32[16,128], index: 3, kind: output, shape index: {}]  }
   0x1   :  { %9 = vsyncpa [#allocation6], 0 }
   0x2   :  { %10 = vsyncpa [#allocation4], 0  ;;  %s627_s12 = smov [#allocation2]  }
   0x3   :  { %s16_s13 = sshll.u32 %s627_s12, 4  ;;  %s17_s13 = int_to_ptr.vmem [resolvable:$true] %s16_s13 }
   0x4   :  { %s569_s14 = scalar_lea.vmem %s17_s13, 512  ;;  %p574_p1 = scmp.lt.s32.totalorder %s17_s13, %s17_s13 }
   0x5   :  { %p570_p0 = scmp.ne.s32.totalorder %s17_s13, %s569_s14  ;;  %p575_p2 = scmp.lt.s32.totalorder %s569_s14, %s569_s14 }
   0x7   :  { %p576_p3 = por %p575_p2, %p574_p1 }
   0x9   :  { %p577_p4 = pnand %p576_p3, %p570_p0 }
   0xb   :  { %580 = shalt.err (!%p577_p4)
}
   0xc   :  { %s628_s15 = smov 256   ;;  %s629_s16 = smov 16  }
   0xd   :  { %22 = dma.hbm_to_vmem [thread:$0]  %s668_s0, 512, %s17_s13, [#allocation3], %s628_s15, %s628_s15, %s629_s16  }
   0xe   :  { %s630_s19 = smov [#allocation5]  }
   0xf   :  { %s28_s20 = sshll.u32 %s630_s19, 4  ;;  %s29_s20 = int_to_ptr.vmem [resolvable:$true] %s28_s20 }
  0x10   :  { %s589_s21 = scalar_lea.vmem %s29_s20, 4096  ;;  %p594_p6 = scmp.lt.s32.totalorder %s29_s20, %s29_s20 }
  0x11   :  { %p590_p5 = scmp.ne.s32.totalorder %s29_s20, %s589_s21  ;;  %p595_p7 = scmp.lt.s32.totalorder %s589_s21, %s589_s21 }
  0x13   :  { %p596_p8 = por %p595_p7, %p594_p6 }
  0x15   :  { %p597_p9 = pnand %p596_p8, %p590_p5 }
  0x17   :  { %600 = shalt.err (!%p597_p9)
}
  0x18   :  { %s631_s22 = smov 64   ;;  %s632_s23 = smov 4  }
  0x19   :  { %34 = dma.hbm_to_vmem [thread:$0]  %s669_s1, 4096, %s29_s20, [#allocation6], %s631_s22, %s631_s22, %s632_s23  }
  0x1a   :  { %621 = dma.done.wait [#allocation3], 512  }
  0x1b   :  { %622 = vsyncadd [#allocation3], 4294966784 }
  0x1c   :  { %623 = dma.done.wait [#allocation6], 4096  }
  0x1d   :  { %624 = vsyncadd [#allocation6], 4294963200  ;;  %v523_v0 = vld [vmem:[#allocation5 + $0x78] sm:$0xff]   ;;  %v527_v4 = vld [vmem:[#allocation5 + $0x70] sm:$0xff]   ;;  %s633_s26 = smov [#allocation7]  }
  0x1e   :  { %v524_v1 = vld [vmem:[#allocation5 + $0xf8] sm:$0xff]   ;;  %470 = vmatprep.subr.bf16.mxu0 %v523_v0  ;;  %v528_v5 = vld [vmem:[#allocation5 + $0xf0] sm:$0xff]   ;;  %v531_v8 = vld [vmem:[#allocation5 + $0x68] sm:$0xff]   ;;  %s420_s27 = sshll.u32 %s633_s26, 4  ;;  %s421_s27 = int_to_ptr.vmem [resolvable:$true] %s420_s27 }
  0x1f   :  { %v525_v2 = vld [vmem:[#allocation5 + $0x38] sm:$0xff]   ;;  %492 = vmatprep.subr.bf16.mxu1 %v524_v1  ;;  %v529_v6 = vld [vmem:[#allocation5 + $0x30] sm:$0xff]   ;;  %v532_v9 = vld [vmem:[#allocation5 + $0xe8] sm:$0xff]   ;;  %p606_p11 = scmp.lt.s32.totalorder %s421_s27, %s421_s27 }
  0x20   :  { %v526_v3 = vld [vmem:[#allocation5 + $0xb8] sm:$0xff]   ;;  %471 = vmatpush3.bf16.msra.mxu0 %v525_v2  ;;  %v530_v7 = vld [vmem:[#allocation5 + $0xb0] sm:$0xff]   ;;  %v533_v10 = vld [vmem:[#allocation5 + $0x28] sm:$0xff]  }
  0x21   :  { %493 = vmatpush3.bf16.msra.mxu1 %v526_v3  ;;  %472 = vmatprep.subr.bf16.mxu0 %v527_v4  ;;  %v534_v11 = vld [vmem:[#allocation5 + $0xa8] sm:$0xff]   ;;  %v535_v12 = vld [vmem:[#allocation5 + $0x60] sm:$0xff]   ;;  %v539_v16 = vld [vmem:[#allocation5 + $0x58] sm:$0xff]  }
  0x22   :  { %494 = vmatprep.subr.bf16.mxu1 %v528_v5  ;;  %v536_v13 = vld [vmem:[#allocation5 + $0xe0] sm:$0xff]   ;;  %v540_v17 = vld [vmem:[#allocation5 + $0xd8] sm:$0xff]   ;;  %v543_v20 = vld [vmem:[#allocation5 + $0x50] sm:$0xff]  }
  0x23   :  { %v537_v14 = vld [vmem:[#allocation5 + $0x20] sm:$0xff]   ;;  %v541_v18 = vld [vmem:[#allocation5 + $0x18] sm:$0xff]   ;;  %v544_v21 = vld [vmem:[#allocation5 + $0xd0] sm:$0xff]  }
  0x24   :  { %473 = vmatpush3.bf16.msra.mxu0 %v529_v6  ;;  %v538_v15 = vld [vmem:[#allocation5 + $0xa0] sm:$0xff]   ;;  %v542_v19 = vld [vmem:[#allocation5 + $0x98] sm:$0xff]   ;;  %v545_v22 = vld [vmem:[#allocation5 + $0x10] sm:$0xff]  }
  0x25   :  { %495 = vmatpush3.bf16.msra.mxu1 %v530_v7  ;;  %474 = vmatprep.subr.bf16.mxu0 %v531_v8  ;;  %v546_v23 = vld [vmem:[#allocation5 + $0x90] sm:$0xff]   ;;  %v547_v24 = vld [vmem:[#allocation5 + $0x48] sm:$0xff]   ;;  %v551_v28 = vld [vmem:[#allocation5 + $0x40] sm:$0xff]  }
  0x26   :  { %496 = vmatprep.subr.bf16.mxu1 %v532_v9  ;;  %v548_v25 = vld [vmem:[#allocation5 + $0xc8] sm:$0xff]   ;;  %v552_v29 = vld [vmem:[#allocation5 + $0xc0] sm:$0xff]  }
  0x27   :  { %v549_v26 = vld [vmem:[#allocation5 + $0x8] sm:$0xff]   ;;  %v553_v30 = vld [vmem:[#allocation5] sm:$0xff]  }
  0x28   :  { %475 = vmatpush3.bf16.msra.mxu0 %v533_v10  ;;  %v550_v27 = vld [vmem:[#allocation5 + $0x88] sm:$0xff]   ;;  %v554_v31 = vld [vmem:[#allocation5 + $0x80] sm:$0xff]  }
  0x29   :  { %497 = vmatpush3.bf16.msra.mxu1 %v534_v11  ;;  %476 = vmatprep.subr.bf16.mxu0 %v535_v12  ;;  %v555_v32 = vld [vmem:[#allocation2] ss:$16 sps:$4 sm:$0xff]   ;;  %v557_v33 = vld [vmem:[#allocation2 + $0x4] ss:$16 sps:$4 sm:$0xff]   ;;  %v558_v34 = vld [vmem:[#allocation2 + $0x8] ss:$16 sps:$4 sm:$0xff]  }
  0x2a   :  { %498 = vmatprep.subr.bf16.mxu1 %v536_v13  ;;  %v560_v35 = vld [vmem:[#allocation2 + $0xc] ss:$16 sps:$4 sm:$0xff]   ;;  %363 = vmatprep.mubr.bf16.mxu0 %v557_v33  ;;  %v433_v38 = vld [vmem:[%s670_s2] ss:$0 sm:$0xff]  ;;  %s601_s2 = scalar_lea.vmem %s421_s27, 256 }
  0x2b   :  { %404 = vmatprep.mubr.bf16.mxu1 %v560_v35  ;;  %p602_p10 = scmp.ne.s32.totalorder %s421_s27, %s601_s2  ;;  %p607_p12 = scmp.lt.s32.totalorder %s601_s2, %s601_s2 }
  0x2c   :  { %477 = vmatpush3.bf16.msra.mxu0 %v537_v14 }
  0x2d   :  { %499 = vmatpush3.bf16.msra.mxu1 %v538_v15  ;;  %478 = vmatprep.subr.bf16.mxu0 %v539_v16  ;;  %p608_p13 = por %p607_p12, %p606_p11 }
  0x2e   :  { %500 = vmatprep.subr.bf16.mxu1 %v540_v17 }
  0x2f   :  { %p609_p0 = pnand %p608_p13, %p602_p10 }
  0x30   :  { %479 = vmatpush3.bf16.msra.mxu0 %v541_v18 }
  0x31   :  { %501 = vmatpush3.bf16.msra.mxu1 %v542_v19  ;;  %480 = vmatprep.subr.bf16.mxu0 %v543_v20 }
  0x32   :  { %502 = vmatprep.subr.bf16.mxu1 %v544_v21 }
  0x34   :  { %481 = vmatpush3.bf16.msra.mxu0 %v545_v22 }
  0x35   :  { %503 = vmatpush3.bf16.msra.mxu1 %v546_v23  ;;  %482 = vmatprep.subr.bf16.mxu0 %v547_v24 }
  0x36   :  { %504 = vmatprep.subr.bf16.mxu1 %v548_v25 }
  0x38   :  { %483 = vmatpush3.bf16.msra.mxu0 %v549_v26 }
  0x39   :  { %505 = vmatpush3.bf16.msra.mxu1 %v550_v27  ;;  %484 = vmatprep.subr.bf16.mxu0 %v551_v28 }
  0x3a   :  { %506 = vmatprep.subr.bf16.mxu1 %v552_v29 }
  0x3c   :  { %485 = vmatpush3.bf16.msra.mxu0 %v553_v30 }
  0x3d   :  { %507 = vmatpush3.bf16.msra.mxu1 %v554_v31 }
  0x3f   :  { %364 = vmatmul.mubr.bf16.vlgmr.msra.gmra.mxu0 %v555_v32 }
  0x40   :  { %405 = vmatmul.mubr.bf16.vlgmr.msra.gmra.mxu1 %v558_v34 }
  0xff   :  { %v486_v36 = vpop.f32.mrf.mxu0 }
 0x100   :  { %v508_v37 = vpop.f32.mrf.mxu1 }
 0x101   :  { %v487_v39 = vpop.f32.mrf.mxu0 }
 0x102   :  { %v488_v40 = vadd.f32 %v487_v39, %v486_v36  ;;  %v509_v41 = vpop.f32.mrf.mxu1 }
 0x103   :  { %v489_v42 = vpop.f32.mrf.mxu0  ;;  %v510_v44 = vadd.f32 %v509_v41, %v508_v37 }
 0x104   :  { %v366_v43 = vadd.f32 %v488_v40, %v433_v38  ;;  %v511_v45 = vpop.f32.mrf.mxu1 }
 0x105   :  { %v490_v46 = vpop.f32.mrf.mxu0 }
 0x106   :  { %v407_v47 = vadd.f32 %v510_v44, %v366_v43  ;;  %v491_v48 = vadd.f32 %v490_v46, %v489_v42  ;;  %v512_v49 = vpop.f32.mrf.mxu1 }
 0x107   :  { %v513_v51 = vadd.f32 %v512_v49, %v511_v45 }
 0x108   :  { %413 = vst [vmem:[#allocation7] sm:$0xff] %v407_v47  ;;  %v369_v50 = vadd.f32 %v491_v48, %v433_v38 }
 0x10a   :  { %v410_v52 = vadd.f32 %v513_v51, %v369_v50 }
 0x10c   :  { %414 = vst [vmem:[#allocation7 + $0x8] sm:$0xff] %v410_v52 }
 0x10d   :  { %612 = shalt.err (!%p609_p0)
}
 0x10e   :  { %s634_s28 = smov 128   ;;  %s635_s29 = smov 8  }
 0x10f   :  { %426 = dma.vmem_to_hbm [thread:$0]  %s421_s27, 256, %s671_s3, [#allocation4], %s634_s28, %s634_s28, %s635_s29  }
 0x110   :  { %625 = dma.done.wait [#allocation4], 256  }
 0x111   :  { %626 = vsyncadd [#allocation4], 4294967040 }
 0x112   :  { %430 = vsyncpa [#allocation3], 1 }
 0x113   :  { %431 = vsyncpa [#allocation6], 1 }
 0x114   :  { %432 = vsyncpa [#allocation4], 1 }

</bundles_post_ra>
